<compile_context>
chip_gen: v5e
topology: v5e:2x2
jax: 0.10.0
libtpu: 0.0.40
codegen_flags: <defaults>
</compile_context>

<pallas_src>
import functools
import math

import jax
import jax.numpy as jnp
from jax import lax
from jax.experimental import pallas as pl
from jax.experimental.pallas import tpu as pltpu


def create_unit_mapping(in_channels, out_channels, kernel_size):
    res = jnp.zeros((out_channels, in_channels, kernel_size, kernel_size), jnp.float32)
    c = kernel_size // 2
    n = min(in_channels, out_channels)
    idx = jnp.arange(n)
    return res.at[idx, idx, c, c].set(1.0)


# ---------------------------------------------------------------------------
# adaptive_conv: the external CUDA op, as a Pallas kernel
# ---------------------------------------------------------------------------

def _adaptive_conv_kernel(coords_ref, a_ref, o_ref, *, in_h, in_w, pad_h, pad_w, ksize):
    # coords_ref: (1, 3, TP)        rows = (y coord, x coord, dilation) per output pixel
    # a_ref     : (1, K*K, O*H, W)  precomputed  W_k @ X  (tap-major, rows grouped (o, row))
    # o_ref     : (1, O, TP)        output tile (lane-dense pixel axis)
    coords = coords_ref[0]                       # (3, TP)
    ys = coords[0:1, :]                          # (1, TP)
    xs = coords[1:2, :]                          # (1, TP)
    d = coords[2:3, :]                           # (1, TP)

    c_out = o_ref.shape[1]
    tp = o_ref.shape[2]
    half = (ksize - 1) / 2.0

    qrow = lax.broadcasted_iota(jnp.int32, (in_h, 1), 0).astype(jnp.float32)  # (H, 1)
    qcol = lax.broadcasted_iota(jnp.int32, (in_w, 1), 0).astype(jnp.float32)  # (W, 1)

    # Separable bilinear hat factors, hoisted out of the tap loop.
    mys = []
    mxs = []
    for kk in range(ksize):
        yk = ys + (kk - half) * d - pad_h                         # (1, TP)
        xk = xs + (kk - half) * d - pad_w                         # (1, TP)
        mys.append(jnp.maximum(0.0, 1.0 - jnp.abs(qrow - yk)))    # (H, TP)
        mxs.append(jnp.maximum(0.0, 1.0 - jnp.abs(qcol - xk)))    # (W, TP)

    acc = jnp.zeros((c_out, tp), jnp.float32)
    for kh in range(ksize):
        for kw in range(ksize):
            a_k = a_ref[0, kh * ksize + kw]                       # (O*H, W)
            tmp = jnp.dot(a_k, mxs[kw],
                          preferred_element_type=jnp.float32,
                          precision=lax.Precision.HIGH)           # (O*H, TP)  MXU
            tmp = tmp.reshape(c_out, in_h, tp) * mys[kh][None, :, :]
            acc = acc + jnp.sum(tmp, axis=1)                      # (O, TP)
    o_ref[0] = acc


def _pick_tile_p(p, max_tile=4096):
    """Largest lane-friendly (multiple of 128) tile of the pixel axis dividing p."""
    if p <= max_tile:
        return p
    for t in range(max_tile - max_tile % 128, 127, -128):
        if p % t == 0:
            return t
    return p


def _row_coord_map(stride_h, h_out, w_out):
    b = stride_h.shape[0]
    s = stride_h.reshape(b, h_out, -1)
    if s.shape[-1] == w_out:
        return s
    return jnp.broadcast_to(s[:, :, :1], (b, h_out, w_out))


def _col_coord_map(stride_w, h_out, w_out):
    b = stride_w.shape[0]
    s = stride_w.reshape(b, -1)
    if s.shape[-1] == h_out * w_out:
        return s.reshape(b, h_out, w_out)
    return jnp.broadcast_to(s.reshape(b, 1, w_out), (b, h_out, w_out))


def adaptive_conv(x, dilation, weight, stride_h, stride_w, padding,
                  groups=1, adaptive_groups=1, *, max_tile=4096):
    # TODO(synk): grouped paths (groups > 1 / adaptive_groups > 1) of the external
    # CUDA adaptive_conv op are not implemented.
    assert groups == 1 and adaptive_groups == 1
    b, c, h, w = x.shape
    o, ci, kh_, kw_ = weight.shape
    assert ci == c and kh_ == kw_
    k = kh_

    h_out = stride_h.shape[1]
    w_out = stride_w.shape[1]
    p = h_out * w_out

    ys = _row_coord_map(stride_h, h_out, w_out).astype(jnp.float32)
    xs = _col_coord_map(stride_w, h_out, w_out).astype(jnp.float32)
    d = dilation.reshape(b, h_out, w_out).astype(jnp.float32)
    coords = jnp.stack([ys, xs, d], axis=1).reshape(b, 3, p)     # (B, 3, P)

    # Hoisted, tile-independent tap-weight x image matmul (one XLA einsum).
    w_taps = jnp.transpose(weight, (2, 3, 0, 1)).reshape(k * k, o, c).astype(jnp.float32)
    x_flat = x.reshape(b, c, h * w).astype(jnp.float32)
    a = jnp.einsum('koc,bcq->bkoq', w_taps, x_flat,
                   precision=lax.Precision.HIGHEST)              # (B, K*K, O, H*W)
    a = a.reshape(b, k * k, o * h, w)                            # rows grouped (o, row)

    tile_p = _pick_tile_p(p, max_tile)
    kernel = functools.partial(_adaptive_conv_kernel, in_h=h, in_w=w,
                               pad_h=padding[0], pad_w=padding[1], ksize=k)

    out = pl.pallas_call(
        kernel,
        out_shape=jax.ShapeDtypeStruct((b, o, p), jnp.float32),
        grid=(b, p // tile_p),
        in_specs=[
            pl.BlockSpec((1, 3, tile_p), lambda bi, ti: (bi, 0, ti)),
            pl.BlockSpec((1, k * k, o * h, w), lambda bi, ti: (bi, 0, 0, 0)),
        ],
        out_specs=pl.BlockSpec((1, o, tile_p), lambda bi, ti: (bi, 0, ti)),
        compiler_params=pltpu.CompilerParams(
            dimension_semantics=("parallel", "parallel")),
    )(coords, a)
    return out.reshape(b, o, h_out, w_out)


# ---------------------------------------------------------------------------
# conv_dilation: the Pack's stride-2 Conv2d, as a tiny Pallas matmul kernel
# ---------------------------------------------------------------------------

def _dilation_conv_kernel(p_ref, w_ref, b_ref, o_ref):
    # p_ref: (1, C*K*K, P)   im2col patches
    # w_ref: (AG, C*K*K)     conv weight, flattened
    # b_ref: (AG, 1)         conv bias
    # o_ref: (1, AG, P)
    o_ref[0] = (jnp.dot(w_ref[...], p_ref[0],
                        preferred_element_type=jnp.float32,
                        precision=lax.Precision.HIGHEST)
                + b_ref[...])


# ---------------------------------------------------------------------------
# Module wrappers
# ---------------------------------------------------------------------------

class AdaptiveConv:
    def __init__(self, in_channels, out_channels, kernel_size=3, padding=0,
                 groups=1, adaptive_groups=1, dilation_factor=1, bias=False,
                 fix=False, pool=False):
        assert not bias
        assert in_channels % groups == 0
        assert out_channels % groups == 0
        self.in_channels = in_channels
        self.out_channels = out_channels
        self.kernel_size = (kernel_size, kernel_size)
        self.padding = (padding, padding)
        self.groups = groups
        self.adaptive_groups = adaptive_groups
        self.d_factor = dilation_factor
        self.pool = pool
        # identity (center-tap, diagonal-channel) kernel, exactly as in __init__
        self.weight = create_unit_mapping(in_channels, out_channels, kernel_size)

    def forward(self, x, stride_h, stride_w, dilation=None):
        # TODO(synk): the `pool` (max_pool1d stride-map resampling) branch is not implemented.
        input_h, input_w = x.shape[2], x.shape[3]
        stride_h = (stride_h + 1.0) * (input_h - 1) / 2.0
        stride_w = (stride_w + 1.0) * (input_w - 1) / 2.0
        if dilation is None:
            b = x.shape[0]
            dilation = jnp.full((b, 1, stride_h.shape[1], stride_w.shape[1]),
                                float(self.d_factor), jnp.float32)
        return adaptive_conv(x, dilation, self.weight, stride_h, stride_w,
                             self.padding, self.groups, self.adaptive_groups)

    def __call__(self, *args, **kwargs):
        return self.forward(*args, **kwargs)


class AdaptiveConvPack(AdaptiveConv):
    def __init__(self, *args, key=None, **kwargs):
        super().__init__(*args, **kwargs)
        kh, kw = self.kernel_size
        n = self.in_channels * kh * kw
        stdv = 1.0 / math.sqrt(n)
        if key is None:
            key = jax.random.PRNGKey(0)
        # nn.Conv2d(in_channels, adaptive_groups, kernel_size, stride=2, padding=1)
        self.dilation_weight = jax.random.uniform(
            key, (self.adaptive_groups, self.in_channels, kh, kw),
            jnp.float32, minval=-stdv, maxval=stdv)
        self.dilation_bias = jnp.zeros((self.adaptive_groups,), jnp.float32)

    def _conv_dilation(self, x):
        b, c, h, w = x.shape
        kh, kw = self.kernel_size
        ag = self.adaptive_groups
        h_out = (h + 2 - kh) // 2 + 1
        w_out = (w + 2 - kw) // 2 + 1
        xp = jnp.pad(x, ((0, 0), (0, 0), (1, 1), (1, 1)))
        taps = []
        for i in range(kh):
            for j in range(kw):
                taps.append(xp[:, :, i:i + 2 * (h_out - 1) + 1:2,
                                j:j + 2 * (w_out - 1) + 1:2])
        patches = jnp.stack(taps, axis=2).reshape(b, c * kh * kw, h_out * w_out)
        patches = patches.astype(jnp.float32)
        w2d = self.dilation_weight.reshape(ag, c * kh * kw)
        b2d = self.dilation_bias.reshape(ag, 1)
        out = pl.pallas_call(
            _dilation_conv_kernel,
            out_shape=jax.ShapeDtypeStruct((b, ag, h_out * w_out), jnp.float32),
            grid=(b,),
            in_specs=[
                pl.BlockSpec((1, c * kh * kw, h_out * w_out), lambda bi: (bi, 0, 0)),
                pl.BlockSpec((ag, c * kh * kw), lambda bi: (0, 0)),
                pl.BlockSpec((ag, 1), lambda bi: (0, 0)),
            ],
            out_specs=pl.BlockSpec((1, ag, h_out * w_out), lambda bi: (bi, 0, 0)),
            compiler_params=pltpu.CompilerParams(dimension_semantics=("parallel",)),
        )(patches, w2d, b2d)
        return out.reshape(b, ag, h_out, w_out)

    def forward(self, x, stride_h=None, stride_w=None):
        dilation = self._conv_dilation(x)
        if stride_h is None or stride_w is None:
            b, _, h, _ = x.shape
            base = jnp.arange(0, h, 2, dtype=jnp.float32)
            stride_h = jnp.broadcast_to(base[None, :], (b, base.shape[0]))[..., None]
            stride_w = stride_h
        return adaptive_conv(x, dilation, self.weight, stride_h, stride_w,
                             self.padding, self.groups, self.adaptive_groups)


# ---------------------------------------------------------------------------
# Pure-JAX reference (identity weight -> bilinear grid sample, zero padding)
# ---------------------------------------------------------------------------

def _reference_identity_sample(x, stride_h, stride_w):
    b, c, h, w = x.shape
    h_out = stride_h.shape[1]
    w_out = stride_w.shape[1]
    ys = jnp.broadcast_to(stride_h.reshape(b, h_out, 1), (b, h_out, w_out)).reshape(b, -1)
    xs = jnp.broadcast_to(stride_w.reshape(b, 1, w_out), (b, h_out, w_out)).reshape(b, -1)
    y0 = jnp.floor(ys)
    x0 = jnp.floor(xs)
    wy1 = ys - y0
    wy0 = 1.0 - wy1
    wx1 = xs - x0
    wx0 = 1.0 - wx1
    x_flat = x.reshape(b, c, h * w)

    def corner(yc, xc, wgt):
        valid = (yc >= 0) & (yc < h) & (xc >= 0) & (xc < w)
        idx = (jnp.clip(yc, 0, h - 1).astype(jnp.int32) * w
               + jnp.clip(xc, 0, w - 1).astype(jnp.int32))
        g = jax.vmap(lambda xb, ib: xb[:, ib])(x_flat, idx)       # (B, C, P)
        return g * (wgt * valid)[:, None, :]

    out = (corner(y0, x0, wy0 * wx0) + corner(y0, x0 + 1, wy0 * wx1)
           + corner(y0 + 1, x0, wy1 * wx0) + corner(y0 + 1, x0 + 1, wy1 * wx1))
    return out.reshape(b, c, h_out, w_out)


if __name__ == "__main__":
    key = jax.random.PRNGKey(0)
    k1, k2, k3, k4 = jax.random.split(key, 4)

    batch, chan, spatial = 2, 4, 16
    x = jax.random.normal(k1, (batch, chan, spatial, spatial), jnp.float32)

    module = AdaptiveConvPack(in_channels=chan, out_channels=chan, kernel_size=3,
                              padding=0, groups=1, adaptive_groups=1, bias=False,
                              key=k2)

    # 1) default path: stride_h = stride_w = arange(0, H, 2).  With the identity
    #    weight the op reduces to the strided subsample x[:, :, ::2, ::2].
    out = module(x)
    out = jax.block_until_ready(out)
    assert out.shape == (batch, chan, spatial // 2, spatial // 2)
    assert jnp.allclose(out, x[:, :, ::2, ::2], atol=1e-3, rtol=1e-3)

    # 2) explicit fractional strides: identity weight -> bilinear grid sample.
    h_out = spatial // 2
    sh = jax.random.uniform(k3, (batch, h_out, 1), jnp.float32,
                            minval=0.0, maxval=spatial - 1.0)
    sw = jax.random.uniform(k4, (batch, h_out, 1), jnp.float32,
                            minval=0.0, maxval=spatial - 1.0)
    out2 = module(x, sh, sw)
    out2 = jax.block_until_ready(out2)
    ref2 = _reference_identity_sample(x, sh, sw)
    assert jnp.allclose(out2, ref2, atol=1e-3, rtol=1e-3)

    print("KERNEL_OK")
</pallas_src>

<mosaic_0001>
module attributes {stable_mosaic.version = 11 : i64} {
  func.func @_dilation_conv_kernel(%arg0: i32, %arg1: memref<1x36x64xf32, #tpu.memory_space<vmem>>, %arg2: memref<1x36xf32, #tpu.memory_space<vmem>>, %arg3: memref<1x1xf32, #tpu.memory_space<vmem>>, %arg4: memref<1x1x64xf32, #tpu.memory_space<vmem>>) attributes {dimension_semantics = [#tpu.dimension_semantics<parallel>], iteration_bounds = array<i64: 2>, scalar_prefetch = 0 : i64, scratch_operands = 0 : i64, tpu.core_type = #tpu.core_type<tc>, window_params = [{transform_indices = @transform_0, window_bounds = array<i64: 1, 36, 64>}, {pipeline_mode = #tpu.pipeline_mode<synchronous>, transform_indices = @transform_1, window_bounds = array<i64: 1, 36>}, {pipeline_mode = #tpu.pipeline_mode<synchronous>, transform_indices = @transform_2, window_bounds = array<i64: 1, 1>}, {transform_indices = @transform_3, window_bounds = array<i64: 1, 1, 64>}]} {
    %c0 = arith.constant 0 : index
    %c0_0 = arith.constant 0 : index
    %0 = vector.load %arg2[%c0, %c0_0] : memref<1x36xf32, #tpu.memory_space<vmem>>, vector<1x36xf32>
    %c0_1 = arith.constant 0 : index
    %c0_2 = arith.constant 0 : index
    %c0_3 = arith.constant 0 : index
    %1 = vector.load %arg1[%c0_1, %c0_2, %c0_3] : memref<1x36x64xf32, #tpu.memory_space<vmem>>, vector<1x36x64xf32>
    %2 = vector.shape_cast %1 : vector<1x36x64xf32> to vector<36x64xf32>
    %cst = arith.constant dense<0.000000e+00> : vector<1x64xf32>
    %3 = tpu.matmul %0, %2, %cst {dimension_numbers = #tpu.dot_dimension_numbers<[1], [0], [0], [1], [0, 0, 1, 1], [], []>, precision = #tpu.contract_precision<fp32>} : vector<1x36xf32>, vector<36x64xf32>, vector<1x64xf32> -> vector<1x64xf32>
    %c0_4 = arith.constant 0 : index
    %c0_5 = arith.constant 0 : index
    %4 = vector.load %arg3[%c0_4, %c0_5] : memref<1x1xf32, #tpu.memory_space<vmem>>, vector<1x1xf32>
    %5 = vector.broadcast %4 : vector<1x1xf32> to vector<1x64xf32>
    %6 = arith.addf %3, %5 : vector<1x64xf32>
    %c0_6 = arith.constant 0 : index
    %c0_7 = arith.constant 0 : index
    %c0_8 = arith.constant 0 : index
    %7 = vector.load %arg4[%c0_6, %c0_7, %c0_8] : memref<1x1x64xf32, #tpu.memory_space<vmem>>, vector<1x1x64xf32>
    %8 = vector.shape_cast %7 : vector<1x1x64xf32> to vector<1x64xf32>
    %9 = vector.shape_cast %6 : vector<1x64xf32> to vector<1x1x64xf32>
    tpu.vector_store %arg4[%c0_6, %c0_7, %c0_8], %9 {strides = array<i32>} : memref<1x1x64xf32, #tpu.memory_space<vmem>>, vector<1x1x64xf32>,
    return
  }
  func.func @transform_0(%arg0: i32) -> (i32, i32, i32) {
    %c0_i32 = arith.constant 0 : i32
    %c0_i32_0 = arith.constant 0 : i32
    %c0_i32_1 = arith.constant 0 : i32
    return %arg0, %c0_i32, %c0_i32_0 : i32, i32, i32
  }
  func.func @transform_1(%arg0: i32) -> (i32, i32) {
    %c0_i32 = arith.constant 0 : i32
    %c0_i32_0 = arith.constant 0 : i32
    %c0_i32_1 = arith.constant 0 : i32
    return %c0_i32, %c0_i32_0 : i32, i32
  }
  func.func @transform_2(%arg0: i32) -> (i32, i32) {
    %c0_i32 = arith.constant 0 : i32
    %c0_i32_0 = arith.constant 0 : i32
    %c0_i32_1 = arith.constant 0 : i32
    return %c0_i32, %c0_i32_0 : i32, i32
  }
  func.func @transform_3(%arg0: i32) -> (i32, i32, i32) {
    %c0_i32 = arith.constant 0 : i32
    %c0_i32_0 = arith.constant 0 : i32
    %c0_i32_1 = arith.constant 0 : i32
    return %arg0, %c0_i32, %c0_i32_0 : i32, i32, i32
  }
}

</mosaic_0001>

<bundles_post_ra>
// kernel: tpu_custom_call.1
= control target key start
LH: loop header
LB: loop body
LE: loop exit
PB: predicated region body
PF: predicated region fallthrough
CT: control target
= control target key end

     0   :  { %s690_s0 = inlined_call_operand.vmem [shape: f32[2,36,64], index: 0, kind: input, shape index: {}]   ;;  %s691_s1 = inlined_call_operand.vmem [shape: f32[1,36], index: 1, kind: input, shape index: {}]   ;;  %s692_s2 = inlined_call_operand.<no memory space> [shape: f32[1,1], index: 2, kind: input, shape index: {}]   ;;  %s693_s3 = inlined_call_operand.hbm [shape: f32[2,1,64], index: 3, kind: output, shape index: {}]  }
   0x1   :  { %v8_v0 = vstv %s692_s2 }
   0x2   :  { %9 = vst [vmem:[#allocation2] sm:$0x1] %v8_v0 }
   0x3   :  { %10 = vsyncpa [#allocation4], 0 }
   0x4   :  { %12 = vsyncpa [#allocation4 + $0x1], 0  ;;  %s596_s14 = smov 0   ;;  %s598_s15 = smov 0  }
   0x5   :  { %s600_s16 = smov 0   ;;  %s602_s17 = smov 0  }
   0x6 LB: > { %s617_s2 = sadd.s32 4294967295, %s570_s17   ;;  %s459_s18 = sadd.s32 4294967294, %s570_s17   ;;  %s570_s17 = sphi %s602_s17, %s699_s17   ;;  %s566_s16 = sphi %s600_s16, %s698_s16   ;;  %s562_s15 = sphi %s598_s15, %s697_s15   ;;  %s558_s14 = sphi %s596_s14, %s696_s14  }
   0x7   : > { %s621_s19 = sadd.s32 1, %s570_s17   ;;  %s93_s20 = sadd.s32 1, %s566_s16 }
   0x8   : > { %s90_s21 = ssub.s32 %s570_s17, %s621_s19  ;;  %p103_p0 = scmp.ne.s32.totalorder %s566_s16, %s562_s15 }
   0x9   : > { %p91_p1 = scmp.eq.s32.totalorder %s90_s21, 0  ;;  %p104_p2 = scmp.eq.s32.totalorder %s617_s2, 1 }
   0xa   : > { %p109_p3 = scmp.ne.s32.totalorder %s562_s15, %s558_s14  ;;  %p110_p4 = scmp.eq.s32.totalorder %s459_s18, 1 }
   0xb   : > { %s632_s22 = scalar_select %p91_p1, %s566_s16, %s93_s20  }
   0xc   : > { %p634_p5 = por %p104_p2, %p103_p0  ;;  %p638_p6 = por %p110_p4, %p109_p3 }
   0xd   : > { %p462_p7 = scmp.ge.s32.totalorder %s570_s17, 1  ;;  %p142_p8 = scmp.lt.s32.totalorder %s570_s17, 3 }
   0xf   : > { %p143_p9 = pnand %p462_p7, %p142_p8 }
  0x10   : > { %p165_p10 = scmp.lt.s32.totalorder (!%p143_p9), %s617_s2, 1  ;;  %s163_s5 = sand.u32 (!%p143_p9), 1, %s562_s15  }
  0x11   : > { %146 = sbr.rel (%p143_p9) target bundleno = 189 (0xbd), region = 32  ;;  %s400_s8 = scalar_lea.hbm (!%p143_p9), %s693_s3, %s617_s2 }
  0x12   : > { %s164_s9 = scalar_lea.vmem (!%p143_p9), [#allocation3], %s163_s5  ;;  %s404_s11 = sshll.u32 (!%p143_p9), %s400_s8, 4  ;;  %s405_s11 = int_to_ptr.hbm [resolvable:$true] %s404_s11 }
  0x13   : > { %s402_s10 = sshll.u32 (!%p143_p9), %s164_s9, 4  ;;  %s392_s12 = scalar_lea.sflag (!%p143_p9), [#allocation4], %s163_s5  ;;  %s403_s10 = int_to_ptr.vmem [resolvable:$true] %s402_s10 }
  0x14   : > { %s522_s13 = sshra.s32 (!%p143_p9), %s405_s11, 4  ;;  %s528_s21 = scalar_lea.hbm (!%p143_p9), %s693_s3, 2  ;;  %s523_s13 = int_to_ptr.hbm [resolvable:$true] %s522_s13 }
  0x15   : > { %s524_s18 = scalar_lea.hbm (!%p143_p9), %s523_s13, 1  ;;  %p529_p0 = scmp.lt.s32.totalorder (!%p143_p9), %s523_s13, %s693_s3 }
  0x16   : > { %v170_v1 = vld [vmem:[%s691_s1] sm:$0x1]  ;;  %vm183_vm0 = vcmask 293888   ;;  %s166_s27 = scalar_select %p165_p10, %s617_s2, 1  ;;  %v572_v5 = vmov 0   ;;  %vm187_vm1 = vcmask 1043456  }
  0x17   : > { %v185_v2 = vsel %vm183_vm0, %v170_v1, 0  ;;  %v176_v3 = vld [vmem:[#allocation2] sm:$0x1]  ;;  %507 = vset.pattern.permute.xlu0 %v572_v5  ;;  %vm389_vm2 = vcmask 516096   ;;  %p525_p11 = scmp.ne.s32.totalorder %s523_s13, %s524_s18  ;;  %p530_p1 = scmp.lt.s32.totalorder %s528_s21, %s524_s18 }
  0x18   : > { %v649_v4 = vand.u32 4294901760, %v185_v2  ;;  %s466_s28 = smul.u32 40, %s166_s27  ;;  %179 = vperm.xlu0 %507, %v176_v3  }
  0x19   : > { %p526_p12 = pnand %p525_p11, %p634_p5  ;;  %p531_p2 = por %p530_p1, %p529_p0 }
  0x1a   : > { %s169_s4 = scalar_lea.vmem %s690_s0, %s466_s28  ;;  %v213_v9 = vsub.f32 %v185_v2, %v649_v4 }
  0x1b   : > { %v175_v6 = vld [vmem:[%s169_s4 + $0x20] sm:$0xf]  ;;  %v174_v7 = vld [vmem:[%s169_s4 + $0x18] sm:$0xff]  ;;  %v173_v8 = vld [vmem:[%s169_s4 + $0x10] sm:$0xff]  ;;  %p527_p13 = pneg %p526_p12 }
  0x1c   : > { %v189_v10 = vsel %vm187_vm1, %v175_v6, 0  ;;  %v204_v11 = vand.u32 4294901760, %v174_v7  ;;  %v206_v12 = vand.u32 4294901760, %v173_v8  ;;  %v172_v13 = vld [vmem:[%s169_s4 + $0x8] sm:$0xff]  ;;  %v171_v14 = vld [vmem:[%s169_s4] sm:$0xff]  ;;  %v214_v23 = vand.u32 4294901760, %v213_v9 }
  0x1d   : > { %v202_v15 = vand.u32 4294901760, %v189_v10  ;;  %v208_v16 = vand.u32 4294901760, %v172_v13  ;;  %v210_v17 = vand.u32 4294901760, %v171_v14  ;;  %p532_p3 = pnand %p531_p2, %p527_p13 }
  0x1e   : > { %v239_v18 = vsub.f32 %v174_v7, %v204_v11  ;;  %v245_v19 = vsub.f32 %v173_v8, %v206_v12  ;;  %v215_v31 = vsub.f32 %v213_v9, %v214_v23 }
  0x1f   : > { %v233_v20 = vsub.f32 %v189_v10, %v202_v15  ;;  %203 = vmatpush.msra.mxu0 %v202_v15  ;;  %311 = vmatpush.msra.mxu3 %v202_v15  ;;  %v251_v21 = vsub.f32 %v172_v13, %v208_v16  ;;  %v257_v22 = vsub.f32 %v171_v14, %v210_v17 }
  0x20   : > { %v240_v24 = vand.u32 4294901760, %v239_v18  ;;  %v246_v25 = vand.u32 4294901760, %v245_v19  ;;  %v216_v37 = vand.u32 4294901760, %v215_v31 }
  0x21   : > { %280 = vmatpush.msra.mxu2 %v233_v20  ;;  %205 = vmatpush.msra.mxu0 %v204_v11  ;;  %v234_v26 = vand.u32 4294901760, %v233_v20  ;;  %v252_v27 = vand.u32 4294901760, %v251_v21  ;;  %v258_v32 = vand.u32 4294901760, %v257_v22 }
  0x22   : > { %313 = vmatpush.msra.mxu3 %v204_v11  ;;  %v241_v28 = vsub.f32 %v239_v18, %v240_v24  ;;  %v247_v30 = vsub.f32 %v245_v19, %v246_v25 }
  0x23   : > { %283 = vmatpush.msra.mxu2 %v239_v18  ;;  %v235_v29 = vsub.f32 %v233_v20, %v234_v26  ;;  %207 = vmatpush.msra.mxu0 %v206_v12  ;;  %v253_v35 = vsub.f32 %v251_v21, %v252_v27  ;;  %v259_v38 = vsub.f32 %v257_v22, %v258_v32 }
  0x24   : > { %315 = vmatpush.msra.mxu3 %v206_v12  ;;  %v242_v34 = vand.u32 4294901760, %v241_v28  ;;  %v248_v36 = vand.u32 4294901760, %v247_v30 }
  0x25   : > { %v236_v33 = vand.u32 4294901760, %v235_v29  ;;  %286 = vmatpush.msra.mxu2 %v245_v19  ;;  %209 = vmatpush.msra.mxu0 %v208_v16  ;;  %v254_v39 = vand.u32 4294901760, %v253_v35  ;;  %v260_v40 = vand.u32 4294901760, %v259_v38 }
  0x26   : > { %317 = vmatpush.msra.mxu3 %v208_v16 }
  0x27   : > { %237 = vmatpush.msra.mxu1 %v236_v33  ;;  %289 = vmatpush.msra.mxu2 %v251_v21 }
  0x28   : > { %211 = vmatpush.msra.mxu0 %v210_v17  ;;  %319 = vmatpush.msra.mxu3 %v210_v17 }
  0x29   : > { %243 = vmatpush.msra.mxu1 %v242_v34  ;;  %292 = vmatpush.msra.mxu2 %v257_v22 }
  0x2a   : > { %295 = vmatmul.f32.vlgmr.msra.gmra.mxu2 %v213_v9  ;;  %341 = vmatpush.msrb.mxu0 %v234_v26 }
  0x2b   : > { %249 = vmatpush.msra.mxu1 %v248_v36  ;;  %217 = vmatmul.f32.vlgmr.msra.gmra.mxu0 %v216_v37 }
  0x2c   : > { %323 = vmatmul.f32.vlgmr.msra.gmra.mxu3 %v214_v23  ;;  %345 = vmatpush.msrb.mxu0 %v240_v24 }
  0x2d   : > { %255 = vmatpush.msra.mxu1 %v254_v39 }
  0x2e   : > { %349 = vmatpush.msrb.mxu0 %v246_v25 }
  0x2f   : > { %261 = vmatpush.msra.mxu1 %v260_v40 }
  0x30   : > { %353 = vmatpush.msrb.mxu0 %v252_v27  ;;  %263 = vmatmul.f32.vlgmr.msra.gmra.mxu1 %v649_v4 }
  0x31   : > { %375 = vmatpush.msrb.mxu1 %v202_v15 }
  0x32   : > { %357 = vmatpush.msrb.mxu0 %v258_v32 }
  0x33   : > { %377 = vmatpush.msrb.mxu1 %v204_v11  ;;  %359 = vmatmul.f32.vlgmr.msrb.gmra.mxu0 %v649_v4 }
  0x35   : > { %379 = vmatpush.msrb.mxu1 %v206_v12 }
  0x37   : > { %381 = vmatpush.msrb.mxu1 %v208_v16 }
  0x39   : > { %383 = vmatpush.msrb.mxu1 %v210_v17 }
  0x3a   : > { %385 = vmatmul.f32.vlgmr.msrb.gmra.mxu1 %v649_v4 }
  0x8a   : > { %v180_v41 = vpop.permute.xlu0 %179 }
  0x8b   : > { %v182_v42 = vperm.slane %v180_v41, 0 }
  0xa8   : > { %v218_v43 = vpop.f32.mrf.mxu0 }
  0xa9   : > { %v219_v44 = vadd.f32 %v218_v43, %v182_v42 }
  0xad   : > { %v264_v45 = vpop.f32.mrf.mxu1  ;;  %v296_v46 = vpop.f32.mrf.mxu2 }
  0xae   : > { %v265_v47 = vadd.f32 %v264_v45, %v219_v44 }
  0xaf   : > { %v324_v48 = vpop.f32.mrf.mxu3 }
  0xb0   : > { %v297_v49 = vadd.f32 %v296_v46, %v265_v47  ;;  %v360_v50 = vpop.f32.mrf.mxu0 }
  0xb2   : > { %v325_v51 = vadd.f32 %v324_v48, %v297_v49 }
  0xb4   : > { %v361_v52 = vadd.f32 %v360_v50, %v325_v51 }
  0xb7   : > { %v386_v53 = vpop.f32.mrf.mxu1 }
  0xb8   : > { %v387_v54 = vadd.f32 %v386_v53, %v361_v52 }
  0xba   : > { %390 = vst.msk [vmem:[%s164_s9] sm:$0x1] %vm389_vm2, %v387_v54 }
  0xbb   : > { %535 = shalt.err (!%p532_p3)
}
  0xbc   : > { %467 = dma.vmem_to_hbm [thread:$0]  (%p634_p5), %s403_s10, 16, %s405_s11, %s392_s12  }
  0xbd PF: > { %p473_p4 = scmp.ge.s32.totalorder %s570_s17, 2  ;;  %s416_s27 = sand.u32 1, %s558_s14  }
  0xbe   : > { %s417_s28 = scalar_lea.sflag [#allocation4], %s416_s27 }
  0xbf   : > { %p470_p7 = pnand %p473_p4, %p638_p6 }
  0xc1   : > { %p471_p8 = pneg %p470_p7 }
  0xc3   : > { %553 = dma.done.wait (%p471_p8), %s417_s28, 16  }
  0xc4   : > { %555 = vsyncadd (%p471_p8), %s417_s28, 4294967280  ;;  %p15_p9 = scmp.ge.s32.totalorder %s621_s19, 4   ;;  %s696_s14 = smov %s562_s15 }
  0xc5   : > { %s697_s15 = smov %s566_s16  ;;  %s698_s16 = smov %s632_s22 }
  0xc6   : > { %s699_s17 = smov %s621_s19  ;;  %17 = sbr.rel (!%p15_p9) target bundleno = 6 (0x6), region = 67 }
  0xcb   :  { %422 = vsyncpa [#allocation4], 1 }
  0xcc   :  { %424 = vsyncpa [#allocation4 + $0x1], 1 }

</bundles_post_ra>
